<compile_context>
chip_gen: v5e
topology: v5e:2x2
jax: 0.10.0
libtpu: 0.0.40
codegen_flags: <defaults>
</compile_context>

<pallas_src>
import functools

import jax
import jax.numpy as jnp
import numpy as np
from jax.experimental import pallas as pl
from jax.experimental.pallas import tpu as pltpu


def _conv3x3_softmax_kernel(x_ref, w_ref, b_ref, m_ref, o_ref,
                            xe_ref, tap_ref, *, H, W, pad, cg):
    # x_ref:   (NB, Cin, H*W)          flat images (NB = batch block)
    # w_ref:   (Cout, 9*cg)            conv weights, tap-major K (zero pad rows)
    # b_ref:   (Cout, 1)               bias
    # m_ref:   (9, 1, H*W)             0/1 tap-validity masks (conv padding=1)
    # o_ref:   (NB, Cout, H*W)         softmax(conv3x3(x)) over classes
    # xe_ref:  (Cin, pad + H*W + pad)  lane-padded staging buffer (VMEM scratch)
    # tap_ref: (9*cg, H*W)             im2col tap stack (VMEM scratch)
    del H  # only W enters the flat-lane tap offsets
    NB, Cin, HW = x_ref.shape
    Cout = o_ref.shape[1]

    # Zero the staging buffers once per invocation: the lane-padding edges of
    # xe and the sublane-padding rows of the tap stack must read as exact
    # zeros (a 0-mask or 0-weight cannot clean up NaN/Inf garbage).  Done
    # unconditionally (not @pl.when(pid==0)) so it stays correct when a
    # parallel batch axis is split across TensorCores.
    xe_ref[...] = jnp.zeros_like(xe_ref)
    tap_ref[...] = jnp.zeros_like(tap_ref)

    # Bias folded into the accumulator; broadcast hoisted out of the batch loop.
    bias = jnp.broadcast_to(b_ref[...], (Cout, HW)).astype(jnp.float32)

    for n in range(NB):  # static unroll: NB is 1, or N on single-TC chips
        # Stage the flat image into lane-padded VMEM (replaces v2's host-side
        # jnp.pad; the HBM DMA block stays exactly (Cin, H*W)).  Lane offset
        # `pad` is a multiple of 128 -> aligned store.
        xe_ref[:, pad:pad + HW] = x_ref[n]
        xe = xe_ref[...]                                 # (Cin, pad+HW+pad)

        # im2col: each of the 9 taps is a static lane-offset window of the
        # flat image (shift = dy*W + dx) times a precomputed border mask that
        # implements the conv's zero padding.  Taps are stacked at 8-sublane-
        # aligned offsets so all stores are plain aligned partial stores.
        for kh in range(3):
            for kw in range(3):
                dy, dx = kh - 1, kw - 1
                t = kh * 3 + kw
                off = pad + dy * W + dx                  # static lane offset
                win = xe[:, off:off + HW]                # (Cin, HW)
                if t != 4:                               # center mask == 1
                    win = win * m_ref[t]
                tap_ref[t * cg:t * cg + Cin, :] = win

        # ONE MXU contraction replaces the nine K=Cin matmuls of v2.
        logits = bias + jnp.dot(w_ref[...], tap_ref[...],
                                preferred_element_type=jnp.float32)

        # Softmax over classes (sublane axis); exact division — the
        # denominator is only (1, HW), so approx reciprocal buys nothing.
        mx = jnp.max(logits, axis=0, keepdims=True)      # (1, HW)
        e = jnp.exp(logits - mx)                         # (Cout, HW)
        s = jnp.sum(e, axis=0, keepdims=True)            # (1, HW)
        o_ref[n] = (e / s).astype(o_ref.dtype)           # lane-dense store


def _tap_masks(H, W):
    """(9, 1, H*W) float32; mask[t] = 1 where the tap's source pixel lies
    inside the image (implements the conv's zero padding as a mask)."""
    m = np.zeros((9, H, W), np.float32)
    for kh in range(3):
        for kw in range(3):
            dy, dx = kh - 1, kw - 1
            m[kh * 3 + kw,
              max(0, -dy):min(H, H - dy),
              max(0, -dx):min(W, W - dx)] = 1.0
    return m.reshape(9, 1, H * W)


def _tensorcores_per_device() -> int:
    """1 on single-TC inference chips (v5e/v6e), 2 on megacore/v7x chips."""
    try:
        kind = jax.devices()[0].device_kind.lower()
    except Exception:  # pragma: no cover - conservative default
        return 2
    if "lite" in kind or "v5e" in kind or "v6e" in kind:
        return 1                      # v5e / v6e (Trillium): one TensorCore
    if "v4" in kind or "v5p" in kind or "v7" in kind:
        return 2                      # megacore / v7x: two TensorCores
    return 2                          # unknown: keep the parallel batch grid


def unet_sem_seg_head_forward(x_nchw, weight_oihw, bias):
    """Inference forward of UnetSemSegHead: softmax(conv3x3(x), dim=1).
    Inputs / outputs follow the PyTorch NCHW convention."""
    N, Cin, H, W = x_nchw.shape
    Cout = weight_oihw.shape[0]
    HW = H * W

    cg = ((Cin + 7) // 8) * 8          # channel group rounded to 8 sublanes
    pad = 128                          # flat-lane padding (multiple of 128)
    assert pad >= W + 1, "lane padding must cover the max 3x3 tap offset"

    # Free reshape (no transpose, no padding pass) of the NCHW input.
    x_flat = x_nchw.reshape(N, Cin, HW)

    # (Cout, Cin, 3, 3) -> (Cout, 9, Cin) tap-major -> zero-pad Cin to cg ->
    # (Cout, 9*cg).  K layout matches the in-kernel tap stack exactly.
    w_t = jnp.transpose(weight_oihw, (0, 2, 3, 1)).reshape(Cout, 9, Cin)
    w2 = jnp.pad(w_t, ((0, 0), (0, 0), (0, cg - Cin))).reshape(Cout, 9 * cg)
    b2 = bias.reshape(Cout, 1)
    masks = jnp.asarray(_tap_masks(H, W))

    # Per-generation batch handling (see header).
    nb = N if _tensorcores_per_device() == 1 else 1
    grid = (N // nb,)
    semantics = ("arbitrary",) if nb == N else ("parallel",)

    kernel = functools.partial(_conv3x3_softmax_kernel,
                               H=H, W=W, pad=pad, cg=cg)

    out_flat = pl.pallas_call(
        kernel,
        out_shape=jax.ShapeDtypeStruct((N, Cout, HW), jnp.float32),
        grid_spec=pltpu.PrefetchScalarGridSpec(
            num_scalar_prefetch=0,
            grid=grid,
            in_specs=[
                pl.BlockSpec((nb, Cin, HW), lambda b: (b, 0, 0)),
                pl.BlockSpec((Cout, 9 * cg), lambda b: (0, 0)),
                pl.BlockSpec((Cout, 1), lambda b: (0, 0)),
                pl.BlockSpec((9, 1, HW), lambda b: (0, 0, 0)),
            ],
            out_specs=pl.BlockSpec((nb, Cout, HW), lambda b: (b, 0, 0)),
            scratch_shapes=[
                pltpu.VMEM((Cin, pad + HW + pad), jnp.float32),  # staging
                pltpu.VMEM((9 * cg, HW), jnp.float32),           # im2col taps
            ],
        ),
        compiler_params=pltpu.CompilerParams(
            dimension_semantics=semantics),
    )(x_flat, w2, b2, masks)

    # Free reshape back to NCHW; no output transpose needed.
    return out_flat.reshape(N, Cout, H, W)


def _reference(x_nchw, weight_oihw, bias):
    y = jax.lax.conv_general_dilated(
        x_nchw.astype(jnp.float32), weight_oihw.astype(jnp.float32),
        window_strides=(1, 1), padding=((1, 1), (1, 1)),
        dimension_numbers=("NCHW", "OIHW", "NCHW"))
    y = y + bias.reshape(1, -1, 1, 1)
    return jax.nn.softmax(y, axis=1)


if __name__ == "__main__":
    # Small deterministic setup consistent with the module:
    # batch=2, in_channel=4, H=W=16, NUM_CLASSES=8
    N, Cin, H, W = 2, 4, 16, 16
    NUM_CLASSES = 8

    key = jax.random.PRNGKey(0)
    kx, kw, kb = jax.random.split(key, 3)
    x = jax.random.normal(kx, (N, Cin, H, W), dtype=jnp.float32)
    # Synthetic Conv2d params (shapes match nn.Conv2d(Cin, NUM_CLASSES, 3, padding=1)).
    weight = jax.random.normal(kw, (NUM_CLASSES, Cin, 3, 3), dtype=jnp.float32) * 0.1
    bias = jax.random.normal(kb, (NUM_CLASSES,), dtype=jnp.float32) * 0.1

    out = unet_sem_seg_head_forward(x, weight, bias)
    out = jax.block_until_ready(out)

    ref = _reference(x, weight, bias)
    assert out.shape == (N, NUM_CLASSES, H, W)
    # Exact-division softmax tail -> tight tolerance (only matmul rounding left).
    assert jnp.allclose(out, ref, atol=1e-5, rtol=1e-5), "mismatch vs reference"
    print("KERNEL_OK")
</pallas_src>

<mosaic_0001>
module attributes {stable_mosaic.version = 11 : i64} {
  func.func @_conv3x3_softmax_kernel(%arg0: i32, %arg1: memref<1x4x256xf32, #tpu.memory_space<vmem>>, %arg2: memref<8x72xf32, #tpu.memory_space<vmem>>, %arg3: memref<8x1xf32, #tpu.memory_space<vmem>>, %arg4: memref<9x1x256xf32, #tpu.memory_space<vmem>>, %arg5: memref<1x8x256xf32, #tpu.memory_space<vmem>>, %arg6: memref<4x512xf32, #tpu.memory_space<vmem>>, %arg7: memref<72x256xf32, #tpu.memory_space<vmem>>) attributes {dimension_semantics = [#tpu.dimension_semantics<parallel>], iteration_bounds = array<i64: 2>, scalar_prefetch = 0 : i64, scratch_operands = 2 : i64, tpu.core_type = #tpu.core_type<tc>, window_params = [{transform_indices = @transform_0, window_bounds = array<i64: 1, 4, 256>}, {pipeline_mode = #tpu.pipeline_mode<synchronous>, transform_indices = @transform_1, window_bounds = array<i64: 8, 72>}, {pipeline_mode = #tpu.pipeline_mode<synchronous>, transform_indices = @transform_2, window_bounds = array<i64: 8, 1>}, {pipeline_mode = #tpu.pipeline_mode<synchronous>, transform_indices = @transform_3, window_bounds = array<i64: 9, 1, 256>}, {transform_indices = @transform_4, window_bounds = array<i64: 1, 8, 256>}]} {
    %cst = arith.constant 0.000000e+00 : f32
    %0 = vector.broadcast %cst : f32 to vector<4x512xf32>
    %c0 = arith.constant 0 : index
    %c0_0 = arith.constant 0 : index
    %1 = vector.load %arg6[%c0, %c0_0] : memref<4x512xf32, #tpu.memory_space<vmem>>, vector<4x512xf32>
    tpu.vector_store %arg6[%c0, %c0_0], %0 {strides = array<i32>} : memref<4x512xf32, #tpu.memory_space<vmem>>, vector<4x512xf32>,
    %cst_1 = arith.constant 0.000000e+00 : f32
    %2 = vector.broadcast %cst_1 : f32 to vector<72x256xf32>
    %c0_2 = arith.constant 0 : index
    %c0_3 = arith.constant 0 : index
    %3 = vector.load %arg7[%c0_2, %c0_3] : memref<72x256xf32, #tpu.memory_space<vmem>>, vector<72x256xf32>
    tpu.vector_store %arg7[%c0_2, %c0_3], %2 {strides = array<i32>} : memref<72x256xf32, #tpu.memory_space<vmem>>, vector<72x256xf32>,
    %c0_4 = arith.constant 0 : index
    %c0_5 = arith.constant 0 : index
    %4 = vector.load %arg3[%c0_4, %c0_5] : memref<8x1xf32, #tpu.memory_space<vmem>>, vector<8x1xf32>
    %5 = vector.shape_cast %4 : vector<8x1xf32> to vector<8x1xf32>
    %6 = vector.broadcast %5 : vector<8x1xf32> to vector<8x256xf32>
    %c0_6 = arith.constant 0 : index
    %c0_7 = arith.constant 0 : index
    %c0_8 = arith.constant 0 : index
    %7 = vector.load %arg1[%c0_6, %c0_7, %c0_8] : memref<1x4x256xf32, #tpu.memory_space<vmem>>, vector<1x4x256xf32>
    %8 = vector.shape_cast %7 : vector<1x4x256xf32> to vector<4x256xf32>
    %c0_9 = arith.constant 0 : index
    %c128 = arith.constant 128 : index
    %9 = vector.load %arg6[%c0_9, %c128] : memref<4x512xf32, #tpu.memory_space<vmem>>, vector<4x256xf32>
    tpu.vector_store %arg6[%c0_9, %c128], %8 {strides = array<i32>} : memref<4x512xf32, #tpu.memory_space<vmem>>, vector<4x256xf32>,
    %c0_10 = arith.constant 0 : index
    %c0_11 = arith.constant 0 : index
    %10 = vector.load %arg6[%c0_10, %c0_11] : memref<4x512xf32, #tpu.memory_space<vmem>>, vector<4x512xf32>
    %11 = vector.extract_strided_slice %10 {offsets = [0, 111], sizes = [4, 256], strides = [1, 1]} : vector<4x512xf32> to vector<4x256xf32>
    %c0_12 = arith.constant 0 : index
    %c0_13 = arith.constant 0 : index
    %c0_14 = arith.constant 0 : index
    %12 = vector.load %arg4[%c0_12, %c0_13, %c0_14] : memref<9x1x256xf32, #tpu.memory_space<vmem>>, vector<1x1x256xf32>
    %13 = vector.shape_cast %12 : vector<1x1x256xf32> to vector<1x256xf32>
    %14 = vector.broadcast %13 : vector<1x256xf32> to vector<4x256xf32>
    %15 = arith.mulf %11, %14 : vector<4x256xf32>
    %c0_15 = arith.constant 0 : index
    %c0_16 = arith.constant 0 : index
    %16 = vector.load %arg7[%c0_15, %c0_16] : memref<72x256xf32, #tpu.memory_space<vmem>>, vector<4x256xf32>
    tpu.vector_store %arg7[%c0_15, %c0_16], %15 {strides = array<i32>} : memref<72x256xf32, #tpu.memory_space<vmem>>, vector<4x256xf32>,
    %17 = vector.extract_strided_slice %10 {offsets = [0, 112], sizes = [4, 256], strides = [1, 1]} : vector<4x512xf32> to vector<4x256xf32>
    %c1 = arith.constant 1 : index
    %c0_17 = arith.constant 0 : index
    %c0_18 = arith.constant 0 : index
    %18 = vector.load %arg4[%c1, %c0_17, %c0_18] : memref<9x1x256xf32, #tpu.memory_space<vmem>>, vector<1x1x256xf32>
    %19 = vector.shape_cast %18 : vector<1x1x256xf32> to vector<1x256xf32>
    %20 = vector.broadcast %19 : vector<1x256xf32> to vector<4x256xf32>
    %21 = arith.mulf %17, %20 : vector<4x256xf32>
    %c8 = arith.constant 8 : index
    %c0_19 = arith.constant 0 : index
    %22 = vector.load %arg7[%c8, %c0_19] : memref<72x256xf32, #tpu.memory_space<vmem>>, vector<4x256xf32>
    tpu.vector_store %arg7[%c8, %c0_19], %21 {strides = array<i32>} : memref<72x256xf32, #tpu.memory_space<vmem>>, vector<4x256xf32>,
    %23 = vector.extract_strided_slice %10 {offsets = [0, 113], sizes = [4, 256], strides = [1, 1]} : vector<4x512xf32> to vector<4x256xf32>
    %c2 = arith.constant 2 : index
    %c0_20 = arith.constant 0 : index
    %c0_21 = arith.constant 0 : index
    %24 = vector.load %arg4[%c2, %c0_20, %c0_21] : memref<9x1x256xf32, #tpu.memory_space<vmem>>, vector<1x1x256xf32>
    %25 = vector.shape_cast %24 : vector<1x1x256xf32> to vector<1x256xf32>
    %26 = vector.broadcast %25 : vector<1x256xf32> to vector<4x256xf32>
    %27 = arith.mulf %23, %26 : vector<4x256xf32>
    %c16 = arith.constant 16 : index
    %c0_22 = arith.constant 0 : index
    %28 = vector.load %arg7[%c16, %c0_22] : memref<72x256xf32, #tpu.memory_space<vmem>>, vector<4x256xf32>
    tpu.vector_store %arg7[%c16, %c0_22], %27 {strides = array<i32>} : memref<72x256xf32, #tpu.memory_space<vmem>>, vector<4x256xf32>,
    %29 = vector.extract_strided_slice %10 {offsets = [0, 127], sizes = [4, 256], strides = [1, 1]} : vector<4x512xf32> to vector<4x256xf32>
    %c3 = arith.constant 3 : index
    %c0_23 = arith.constant 0 : index
    %c0_24 = arith.constant 0 : index
    %30 = vector.load %arg4[%c3, %c0_23, %c0_24] : memref<9x1x256xf32, #tpu.memory_space<vmem>>, vector<1x1x256xf32>
    %31 = vector.shape_cast %30 : vector<1x1x256xf32> to vector<1x256xf32>
    %32 = vector.broadcast %31 : vector<1x256xf32> to vector<4x256xf32>
    %33 = arith.mulf %29, %32 : vector<4x256xf32>
    %c24 = arith.constant 24 : index
    %c0_25 = arith.constant 0 : index
    %34 = vector.load %arg7[%c24, %c0_25] : memref<72x256xf32, #tpu.memory_space<vmem>>, vector<4x256xf32>
    tpu.vector_store %arg7[%c24, %c0_25], %33 {strides = array<i32>} : memref<72x256xf32, #tpu.memory_space<vmem>>, vector<4x256xf32>,
    %35 = vector.extract_strided_slice %10 {offsets = [0, 128], sizes = [4, 256], strides = [1, 1]} : vector<4x512xf32> to vector<4x256xf32>
    %c32 = arith.constant 32 : index
    %c0_26 = arith.constant 0 : index
    %36 = vector.load %arg7[%c32, %c0_26] : memref<72x256xf32, #tpu.memory_space<vmem>>, vector<4x256xf32>
    tpu.vector_store %arg7[%c32, %c0_26], %35 {strides = array<i32>} : memref<72x256xf32, #tpu.memory_space<vmem>>, vector<4x256xf32>,
    %37 = vector.extract_strided_slice %10 {offsets = [0, 129], sizes = [4, 256], strides = [1, 1]} : vector<4x512xf32> to vector<4x256xf32>
    %c5 = arith.constant 5 : index
    %c0_27 = arith.constant 0 : index
    %c0_28 = arith.constant 0 : index
    %38 = vector.load %arg4[%c5, %c0_27, %c0_28] : memref<9x1x256xf32, #tpu.memory_space<vmem>>, vector<1x1x256xf32>
    %39 = vector.shape_cast %38 : vector<1x1x256xf32> to vector<1x256xf32>
    %40 = vector.broadcast %39 : vector<1x256xf32> to vector<4x256xf32>
    %41 = arith.mulf %37, %40 : vector<4x256xf32>
    %c40 = arith.constant 40 : index
    %c0_29 = arith.constant 0 : index
    %42 = vector.load %arg7[%c40, %c0_29] : memref<72x256xf32, #tpu.memory_space<vmem>>, vector<4x256xf32>
    tpu.vector_store %arg7[%c40, %c0_29], %41 {strides = array<i32>} : memref<72x256xf32, #tpu.memory_space<vmem>>, vector<4x256xf32>,
    %43 = vector.extract_strided_slice %10 {offsets = [0, 143], sizes = [4, 256], strides = [1, 1]} : vector<4x512xf32> to vector<4x256xf32>
    %c6 = arith.constant 6 : index
    %c0_30 = arith.constant 0 : index
    %c0_31 = arith.constant 0 : index
    %44 = vector.load %arg4[%c6, %c0_30, %c0_31] : memref<9x1x256xf32, #tpu.memory_space<vmem>>, vector<1x1x256xf32>
    %45 = vector.shape_cast %44 : vector<1x1x256xf32> to vector<1x256xf32>
    %46 = vector.broadcast %45 : vector<1x256xf32> to vector<4x256xf32>
    %47 = arith.mulf %43, %46 : vector<4x256xf32>
    %c48 = arith.constant 48 : index
    %c0_32 = arith.constant 0 : index
    %48 = vector.load %arg7[%c48, %c0_32] : memref<72x256xf32, #tpu.memory_space<vmem>>, vector<4x256xf32>
    tpu.vector_store %arg7[%c48, %c0_32], %47 {strides = array<i32>} : memref<72x256xf32, #tpu.memory_space<vmem>>, vector<4x256xf32>,
    %49 = vector.extract_strided_slice %10 {offsets = [0, 144], sizes = [4, 256], strides = [1, 1]} : vector<4x512xf32> to vector<4x256xf32>
    %c7 = arith.constant 7 : index
    %c0_33 = arith.constant 0 : index
    %c0_34 = arith.constant 0 : index
    %50 = vector.load %arg4[%c7, %c0_33, %c0_34] : memref<9x1x256xf32, #tpu.memory_space<vmem>>, vector<1x1x256xf32>
    %51 = vector.shape_cast %50 : vector<1x1x256xf32> to vector<1x256xf32>
    %52 = vector.broadcast %51 : vector<1x256xf32> to vector<4x256xf32>
    %53 = arith.mulf %49, %52 : vector<4x256xf32>
    %c56 = arith.constant 56 : index
    %c0_35 = arith.constant 0 : index
    %54 = vector.load %arg7[%c56, %c0_35] : memref<72x256xf32, #tpu.memory_space<vmem>>, vector<4x256xf32>
    tpu.vector_store %arg7[%c56, %c0_35], %53 {strides = array<i32>} : memref<72x256xf32, #tpu.memory_space<vmem>>, vector<4x256xf32>,
    %55 = vector.extract_strided_slice %10 {offsets = [0, 145], sizes = [4, 256], strides = [1, 1]} : vector<4x512xf32> to vector<4x256xf32>
    %c8_36 = arith.constant 8 : index
    %c0_37 = arith.constant 0 : index
    %c0_38 = arith.constant 0 : index
    %56 = vector.load %arg4[%c8_36, %c0_37, %c0_38] : memref<9x1x256xf32, #tpu.memory_space<vmem>>, vector<1x1x256xf32>
    %57 = vector.shape_cast %56 : vector<1x1x256xf32> to vector<1x256xf32>
    %58 = vector.broadcast %57 : vector<1x256xf32> to vector<4x256xf32>
    %59 = arith.mulf %55, %58 : vector<4x256xf32>
    %c64 = arith.constant 64 : index
    %c0_39 = arith.constant 0 : index
    %60 = vector.load %arg7[%c64, %c0_39] : memref<72x256xf32, #tpu.memory_space<vmem>>, vector<4x256xf32>
    tpu.vector_store %arg7[%c64, %c0_39], %59 {strides = array<i32>} : memref<72x256xf32, #tpu.memory_space<vmem>>, vector<4x256xf32>,
    %c0_40 = arith.constant 0 : index
    %c0_41 = arith.constant 0 : index
    %61 = vector.load %arg2[%c0_40, %c0_41] : memref<8x72xf32, #tpu.memory_space<vmem>>, vector<8x72xf32>
    %c0_42 = arith.constant 0 : index
    %c0_43 = arith.constant 0 : index
    %62 = vector.load %arg7[%c0_42, %c0_43] : memref<72x256xf32, #tpu.memory_space<vmem>>, vector<72x256xf32>
    %cst_44 = arith.constant dense<0.000000e+00> : vector<8x256xf32>
    %63 = tpu.matmul %61, %62, %cst_44 {dimension_numbers = #tpu.dot_dimension_numbers<[1], [0], [0], [1], [0, 0, 1, 1], [], []>} : vector<8x72xf32>, vector<72x256xf32>, vector<8x256xf32> -> vector<8x256xf32>
    %64 = arith.addf %6, %63 : vector<8x256xf32>
    %cst_45 = arith.constant dense<0xFF800000> : vector<256xf32>
    %65 = vector.multi_reduction <maximumf>, %64, %cst_45 [0] : vector<8x256xf32> to vector<256xf32>
    %66 = vector.shape_cast %65 : vector<256xf32> to vector<1x256xf32>
    %67 = vector.broadcast %66 : vector<1x256xf32> to vector<8x256xf32>
    %68 = arith.subf %64, %67 : vector<8x256xf32>
    %69 = math.exp %68 : vector<8x256xf32>
    %cst_46 = arith.constant dense<0.000000e+00> : vector<256xf32>
    %70 = vector.multi_reduction <add>, %69, %cst_46 [0] : vector<8x256xf32> to vector<256xf32>
    %71 = vector.shape_cast %70 : vector<256xf32> to vector<1x256xf32>
    %72 = vector.broadcast %71 : vector<1x256xf32> to vector<8x256xf32>
    %73 = arith.divf %69, %72 : vector<8x256xf32>
    %c0_47 = arith.constant 0 : index
    %c0_48 = arith.constant 0 : index
    %c0_49 = arith.constant 0 : index
    %74 = vector.load %arg5[%c0_47, %c0_48, %c0_49] : memref<1x8x256xf32, #tpu.memory_space<vmem>>, vector<1x8x256xf32>
    %75 = vector.shape_cast %74 : vector<1x8x256xf32> to vector<8x256xf32>
    %76 = vector.shape_cast %73 : vector<8x256xf32> to vector<1x8x256xf32>
    tpu.vector_store %arg5[%c0_47, %c0_48, %c0_49], %76 {strides = array<i32>} : memref<1x8x256xf32, #tpu.memory_space<vmem>>, vector<1x8x256xf32>,
    return
  }
  func.func @transform_0(%arg0: i32) -> (i32, i32, i32) {
    %c0_i32 = arith.constant 0 : i32
    %c0_i32_0 = arith.constant 0 : i32
    %c0_i32_1 = arith.constant 0 : i32
    return %arg0, %c0_i32, %c0_i32_0 : i32, i32, i32
  }
  func.func @transform_1(%arg0: i32) -> (i32, i32) {
    %c0_i32 = arith.constant 0 : i32
    %c0_i32_0 = arith.constant 0 : i32
    %c0_i32_1 = arith.constant 0 : i32
    return %c0_i32, %c0_i32_0 : i32, i32
  }
  func.func @transform_2(%arg0: i32) -> (i32, i32) {
    %c0_i32 = arith.constant 0 : i32
    %c0_i32_0 = arith.constant 0 : i32
    %c0_i32_1 = arith.constant 0 : i32
    return %c0_i32, %c0_i32_0 : i32, i32
  }
  func.func @transform_3(%arg0: i32) -> (i32, i32, i32) {
    %c0_i32 = arith.constant 0 : i32
    %c0_i32_0 = arith.constant 0 : i32
    %c0_i32_1 = arith.constant 0 : i32
    %c0_i32_2 = arith.constant 0 : i32
    return %c0_i32, %c0_i32_0, %c0_i32_1 : i32, i32, i32
  }
  func.func @transform_4(%arg0: i32) -> (i32, i32, i32) {
    %c0_i32 = arith.constant 0 : i32
    %c0_i32_0 = arith.constant 0 : i32
    %c0_i32_1 = arith.constant 0 : i32
    return %arg0, %c0_i32, %c0_i32_0 : i32, i32, i32
  }
}

</mosaic_0001>

<bundles_post_ra>
// kernel: tpu_custom_call.1
= control target key start
LH: loop header
LB: loop body
LE: loop exit
PB: predicated region body
PF: predicated region fallthrough
CT: control target
= control target key end

     0   :  { %9 = vsyncpa [#allocation5], 0  ;;  %s1209_s0 = inlined_call_operand.hbm [shape: f32[2,4,256], index: 0, kind: input, shape index: {}]   ;;  %s1210_s1 = inlined_call_operand.vmem [shape: f32[8,72], index: 1, kind: input, shape index: {}]   ;;  %s1211_s2 = inlined_call_operand.vmem [shape: f32[8,1], index: 2, kind: input, shape index: {}]   ;;  %s1212_s3 = inlined_call_operand.hbm [shape: f32[9,1,256], index: 3, kind: input, shape index: {}]   ;;  %s1213_s4 = inlined_call_operand.hbm [shape: f32[2,8,256], index: 4, kind: output, shape index: {}]  }
   0x1   :  { %11 = vsyncpa [#allocation5 + $0x1], 0 }
   0x2   :  { %12 = vsyncpa [#allocation8], 0 }
   0x3   :  { %13 = vsyncpa [#allocation6], 0 }
   0x4   :  { %15 = vsyncpa [#allocation6 + $0x1], 0  ;;  %s1018_s15 = smov 0   ;;  %s1020_s16 = smov 0  }
   0x5   :  { %s1022_s17 = smov 0   ;;  %s1024_s18 = smov 0  }
   0x6 LB: > { %s158_s21 = sshll.u32 %s1212_s3, 4  ;;  %s1042_s22 = sadd.s32 4294967295, %s978_s18   ;;  %s978_s18 = sphi %s1024_s18, %s1223_s18   ;;  %s974_s17 = sphi %s1022_s17, %s1222_s17   ;;  %s970_s16 = sphi %s1020_s16, %s1221_s16   ;;  %s966_s15 = sphi %s1018_s15, %s1220_s15   ;;  %s159_s21 = int_to_ptr.hbm [resolvable:$true] %s158_s21 }
   0x7   : > { %p751_p0 = scmp.ge.s32.totalorder %s978_s18, 1  ;;  %p42_p1 = scmp.eq.s32.totalorder %s1042_s22, 0 }
   0x8   : > { %p141_p2 = scmp.lt.s32.totalorder %s978_s18, 3  ;;  %s980_s24 = smov [#allocation7]  }
   0x9   : > { %s160_s25 = sshll.u32 %s980_s24, 4  ;;  %s981_s26 = smov 32   ;;  %s161_s25 = int_to_ptr.vmem [resolvable:$true] %s160_s25 }
   0xa   : > { %p1047_p3 = pnand %p751_p0, %p141_p2  ;;  %s982_s27 = smov 2  }
   0xb   : > { %s750_s28 = sadd.s32 4294967294, %s978_s18   ;;  %s1058_s29 = sadd.s32 1, %s978_s18  }
   0xc   : > { %p778_p4 = pneg %p1047_p3  ;;  %s28_s30 = sadd.s32 1, %s974_s17 }
   0xd   : > { %s25_s5 = ssub.s32 %s978_s18, %s1058_s29  ;;  %p35_p7 = scmp.ne.s32.totalorder %s974_s17, %s970_s16 }
   0xe   : > { %p779_p6 = pnand %p778_p4, %p42_p1  ;;  %p26_p8 = scmp.eq.s32.totalorder %s25_s5, 0 }
   0xf   : > { %p36_p9 = scmp.eq.s32.totalorder %s978_s18, 0  ;;  %p41_p10 = scmp.ne.s32.totalorder %s970_s16, %s966_s15 }
  0x10   : > { %781 = dma.hbm_to_vmem [thread:$0]  (!%p779_p6), %s159_s21, 288, %s161_s25, [#allocation8], %s981_s26, %s981_s26, %s982_s27  }
  0x11   : > { %p128_p11 = scmp.eq.s32.totalorder %s1042_s22, 1  ;;  %p1074_p12 = por %p42_p1, %p41_p10 }
  0x12   : > { %s1070_s6 = scalar_select %p26_p8, %s974_s17, %s28_s30  }
  0x13   : > { %p1078_p13 = por %p128_p11, %p35_p7  ;;  %p134_p0 = scmp.eq.s32.totalorder %s750_s28, 1 }
  0x14   : > { %p37_p2 = por %p36_p9, %p35_p7  ;;  %s174_s9 = sand.u32 1, %s974_s17  }
  0x15   : > { %p1083_p4 = por %p134_p0, %p41_p10  ;;  %p791_p6 = scmp.lt.s32.totalorder %s978_s18, 2 }
  0x16   : > { %s754_s11 = sshll.u32 %s174_s9, 3  ;;  %s768_s12 = sshll.u32 %s978_s18, 3 }
  0x17   : > { %s183_s19 = scalar_lea.hbm %s1209_s0, %s768_s12  ;;  %s178_s21 = scalar_lea.vmem [#allocation4], %s754_s11 }
  0x18   : > { %s185_s20 = sshll.u32 %s183_s19, 4  ;;  %s187_s24 = sshll.u32 %s178_s21, 4  ;;  %s186_s20 = int_to_ptr.hbm [resolvable:$true] %s185_s20  ;;  %s188_s24 = int_to_ptr.vmem [resolvable:$true] %s187_s24 }
  0x19   : > { %p1092_p8 = pnand %p791_p6, %p37_p2  ;;  %s175_s26 = scalar_lea.sflag [#allocation5], %s174_s9 }
  0x1a   : > { %s878_s27 = sshra.s32 %s186_s20, 4  ;;  %s885_s11 = scalar_lea.hbm %s1209_s0, 16  ;;  %s879_s27 = int_to_ptr.hbm [resolvable:$true] %s878_s27 }
  0x1b   : > { %s880_s28 = scalar_lea.hbm %s879_s27, 8  ;;  %p882_p9 = pneg %p1092_p8 }
  0x1c   : > { %p881_p7 = scmp.ne.s32.totalorder %s879_s27, %s880_s28  ;;  %p886_p0 = scmp.lt.s32.totalorder %s879_s27, %s1209_s0 }
  0x1d   : > { %p887_p2 = scmp.lt.s32.totalorder %s885_s11, %s880_s28 }
  0x1e   : > { %p883_p10 = pnand %p882_p9, %p881_p7 }
  0x1f   : > { %p888_p6 = por %p887_p2, %p886_p0 }
  0x20   : > { %p884_p11 = pneg %p883_p10 }
  0x22   : > { %p889_p5 = pnand %p888_p6, %p884_p11 }
  0x24   : > { %892 = shalt.err (!%p889_p5)
}
  0x25   : > { %785 = dma.hbm_to_vmem [thread:$0]  (!%p1092_p8), %s186_s20, 128, %s188_s24, %s175_s26  }
  0x26   : > { %196 = sbr.rel (%p1047_p3) target bundleno = 524 (0x20c), region = 36  ;;  %s1109_s9 = sand.u32 (!%p1047_p3), 1, %s970_s16  }
  0x27   : > { %s758_s14 = sshll.u32 (!%p1047_p3), %s1109_s9, 3  ;;  %s199_s19 = scalar_lea.sflag (!%p1047_p3), [#allocation5], %s1109_s9 }
  0x28   : > { %s202_s21 = scalar_lea.vmem (!%p1047_p3), [#allocation4], %s758_s14 }
  0x2b   : > { %953 = dma.done.wait (%p1074_p12), %s199_s19, 128  }
  0x2c   : > { %955 = vsyncadd (%p1074_p12), %s199_s19, 4294967168 }
  0x2d   : > { %957 = dma.done.wait (%p42_p1), [#allocation8], 288  }
  0x2e   : > { %959 = vsyncadd (%p42_p1), [#allocation8], 4294967008  ;;  %v983_v0 = vmov 0.0   ;;  %v263_v1 = vld [vmem:[#allocation7] sm:$0x3]  ;;  %vm268_vm0 = vcmask 1043456  }
  0x2f   : > { %233 = vst [vmem:[#allocation2] sm:$0xff] %v983_v0  ;;  %v301_v2 = vld [vmem:[#allocation7 + $0x2] sm:$0x3]  ;;  %v338_v3 = vld [vmem:[#allocation7 + $0x4] sm:$0x3]  ;;  %v265_v4 = vperm.slane %v263_v1, 0 }
  0x30   : > { %234 = vst [vmem:[#allocation2 + $0x8] sm:$0xff] %v983_v0  ;;  %v266_v5 = vperm.slane %v263_v1, 1  ;;  %v375_v6 = vld [vmem:[#allocation7 + $0x6] sm:$0x3]  ;;  %v340_v7 = vperm.slane %v338_v3, 0  ;;  %v341_v8 = vperm.slane %v338_v3, 1 }
  0x31   : > { %235 = vst [vmem:[#allocation3] sm:$0xff] %v983_v0  ;;  %v259_v9 = vld [vmem:[%s202_s21] sm:$0xff]  ;;  %v304_v11 = vperm.slane %v301_v2, 1  ;;  %v378_v13 = vperm.slane %v375_v6, 1  ;;  %s984_s23 = smov 111   ;;  %v303_v16 = vperm.slane %v301_v2, 0 }
  0x32   : > { %236 = vst [vmem:[#allocation3 + $0x38] sm:$0xff] %v983_v0  ;;  %v267_v10 = vrot.slane %v266_v5, 4  ;;  %v342_v12 = vrot.slane %v341_v8, 4  ;;  %s985_s7 = smov 113   ;;  %v377_v18 = vperm.slane %v375_v6, 0  ;;  %s986_s20 = smov 127  }
  0x33   : > { %237 = vst [vmem:[#allocation3 + $0x78] sm:$0xff] %v983_v0  ;;  %v305_v17 = vrot.slane %v304_v11, 4  ;;  %v379_v19 = vrot.slane %v378_v13, 4  ;;  %s987_s24 = smov 112   ;;  %vm273_vm1 = vcmask 908288   ;;  %vm310_vm2 = vcmask 916480  }
  0x34   : > { %238 = vst [vmem:[#allocation3 + $0x58] sm:$0xff] %v983_v0  ;;  %v269_v14 = vsel %vm268_vm0, %v265_v4, %v267_v10  ;;  %v343_v15 = vsel %vm268_vm0, %v340_v7, %v342_v12  ;;  %vm347_vm3 = vcmask 924672   ;;  %vm384_vm4 = vcmask 1039360   ;;  %s988_s25 = smov 16   ;;  %v423_v51 = vld [vmem:[#allocation7 + $0xa] sm:$0x3] }
  0x35   : > { %239 = vst [vmem:[#allocation3 + $0x20] sm:$0xff] %v983_v0  ;;  %270 = vrot.lane.b32.xlu0 %v269_v14, %s984_s23  ;;  %344 = vrot.lane.b32.xlu1 %v343_v15, %s985_s7  ;;  %v306_v21 = vsel %vm268_vm0, %v303_v16, %v305_v17  ;;  %v380_v22 = vsel %vm268_vm0, %v377_v18, %v379_v19  ;;  %s989_s26 = smov 15   ;;  %v426_v56 = vperm.slane %v423_v51, 1  ;;  %v425_v59 = vperm.slane %v423_v51, 0  ;;  %s990_s27 = smov 1  }
  0x36   : > { %260 = vst [vmem:[#allocation2 + $0x4] sm:$0xff] %v259_v9  ;;  %v449_v1 = vld [vmem:[#allocation7 + $0xc] sm:$0x3]  ;;  %s991_s28 = smov 17   ;;  %v475_v15 = vld [vmem:[#allocation7 + $0xe] sm:$0x3] }
  0x37   : > { %240 = vst [vmem:[#allocation3 + $0x8] sm:$0xff] %v983_v0  ;;  %v436_v60 = vrot.slane %v426_v56, 4  ;;  %v452_v6 = vperm.slane %v449_v1, 1  ;;  %v451_v11 = vperm.slane %v449_v1, 0  ;;  %v478_v19 = vperm.slane %v475_v15, 1  ;;  %s760_s13 = sshll.u32 %s1109_s9, 4 }
  0x38   : > { %241 = vst [vmem:[#allocation3 + $0x70] sm:$0xff] %v983_v0  ;;  %vm330_vm5 = vcmask 130048   ;;  %vm367_vm6 = vcmask 121856   ;;  %vm404_vm7 = vcmask 7168   ;;  %vm293_vm8 = vcmask 138240   ;;  %s769_s14 = sshll.u32 %s1042_s22, 4 }
  0x39   : > { %242 = vst [vmem:[#allocation3 + $0x80] sm:$0xff] %v983_v0  ;;  %v437_v2 = vsel %vm268_vm0, %v425_v59, %v436_v60  ;;  %v462_v12 = vrot.slane %v452_v6, 4  ;;  %vm545_vm9 = vcmask 588800   ;;  %s232_s22 = scalar_lea.vmem [#allocation9], %s760_s13  ;;  %s928_s30 = scalar_lea.hbm %s1213_s4, 32 }
  0x3a   : > { %243 = vst [vmem:[#allocation3 + $0x88] sm:$0xff] %v983_v0 }
  0x3b   : > { %244 = vst [vmem:[#allocation3 + $0x40] sm:$0xff] %v983_v0  ;;  %v463_v16 = vsel %vm268_vm0, %v451_v11, %v462_v12 }
  0x3c   : > { %245 = vst [vmem:[#allocation3 + $0x50] sm:$0xff] %v983_v0 }
  0x3d   : > { %246 = vst [vmem:[#allocation3 + $0x28] sm:$0xff] %v983_v0  ;;  %v1124_v20 = vld [vmem:[#allocation2] sm:$0xff]  ;;  %307 = vrot.lane.b32.xlu0 %v306_v21, %s987_s24  ;;  %381 = vrot.lane.b32.xlu1 %v380_v22, %s986_s20  ;;  %v1129_v23 = vld [vmem:[#allocation2 + $0x8] sm:$0xff] }
  0x3e   : > { %247 = vst [vmem:[#allocation3 + $0x10] sm:$0xff] %v983_v0  ;;  %427 = vrot.lane.b32.xlu2 %v1124_v20, %s986_s20 }
  0x3f   : > { %248 = vst [vmem:[#allocation3 + $0x48] sm:$0xff] %v983_v0 }
  0x40   : > { %249 = vst [vmem:[#allocation3 + $0x30] sm:$0xff] %v983_v0 }
  0x41   : > { %250 = vst [vmem:[#allocation3 + $0x18] sm:$0xff] %v983_v0 }
  0x42   : > { %251 = vst [vmem:[#allocation3 + $0x68] sm:$0xff] %v983_v0 }
  0x43   : > { %252 = vst [vmem:[#allocation3 + $0x60] sm:$0xff] %v983_v0 }
  0x45   : > { %453 = vrot.lane.b32.xlu0 %v1124_v20, %s985_s7  ;;  %455 = vrot.lane.b32.xlu1 %v1129_v23, %s985_s7  ;;  %s667_s7 = sshll.u32 %s232_s22, 4  ;;  %s668_s7 = int_to_ptr.vmem [resolvable:$true] %s667_s7 }
  0x46   : > { %429 = vrot.lane.b32.xlu2 %v1129_v23, %s986_s20 }
  0x4d   : > { %481 = vrot.lane.b32.xlu0 %v1129_v23, %s987_s24  ;;  %505 = vrot.lane.b32.xlu1 %v1124_v20, %s984_s23 }
  0x4e   : > { %479 = vrot.lane.b32.xlu2 %v1124_v20, %s987_s24  ;;  %s654_s24 = scalar_lea.sflag [#allocation6], %s1109_s9 }
  0x56   : > { %507 = vrot.lane.b32.xlu2 %v1129_v23, %s984_s23  ;;  %s665_s23 = scalar_lea.hbm %s1213_s4, %s769_s14 }
  0x57   : > { %s669_s20 = sshll.u32 %s665_s23, 4  ;;  %s670_s20 = int_to_ptr.hbm [resolvable:$true] %s669_s20 }
  0x98   : > { %v428_v44 = vpop.permute.xlu2 %427 }
  0x99   : > { %v431_v57 = vrot.slane %v428_v44, 4 }
  0xa0   : > { %v430_v55 = vpop.permute.xlu2 %429 }
  0xa1   : > { %v432_v58 = vrot.slane %v430_v55, 4 }
  0xa3   : > { %v433_v63 = vsel %vm268_vm0, %v431_v57, %v432_v58 }
  0xa4   : > { %v434_v3 = vsel %vm384_vm4, %v433_v63, %v430_v55 }
  0xa5   : > { %v439_v7 = vmul.f32 %v437_v2, %v434_v3  ;;  %v253_v2 = vld [vmem:[%s1211_s2] sm:$0xff]  ;;  %v992_v3 = vmov 0  }
  0xa6   : > { %839 = vset.pattern.permute.xlu0 %v992_v3 }
  0xa7   : > { %v271_v24 = vpop.permute.xlu0 %270  ;;  %v345_v29 = vpop.permute.xlu1 %344 }
  0xa8   : > { %v272_v25 = vrot.slane %v271_v24, 4  ;;  %v346_v36 = vrot.slane %v345_v29, 4  ;;  %v480_v14 = vpop.permute.xlu2 %479 }
  0xa9   : > { %v483_v22 = vrot.slane %v480_v14, 4 }
  0xaa   : > { %v274_v26 = vsel %vm273_vm1, %v272_v25, %v271_v24  ;;  %v278_v27 = vmul.f32 %v272_v25, %v1129_v23  ;;  %v348_v39 = vsel %vm347_vm3, %v346_v36, %v345_v29  ;;  %v352_v41 = vmul.f32 %v346_v36, %v1129_v23 }
  0xab   : > { %v277_v28 = vmul.f32 %v274_v26, %v1124_v20  ;;  %v351_v42 = vmul.f32 %v348_v39, %v1124_v20  ;;  %v477_v25 = vperm.slane %v475_v15, 0  ;;  %v488_v26 = vrot.slane %v478_v19, 4 }
  0xac   : > { %283 = vst [vmem:[#allocation1 + $0x10] ss:$2 sm:$0xff] %v278_v27  ;;  %v501_v27 = vld [vmem:[#allocation7 + $0x10] sm:$0x3] }
  0xad   : > { %281 = vst [vmem:[#allocation1] ss:$2 sm:$0xff] %v277_v28 }
  0xaf   : > { %v308_v30 = vpop.permute.xlu0 %307  ;;  %v382_v40 = vpop.permute.xlu1 %381 }
  0xb0   : > { %v309_v31 = vrot.slane %v308_v30, 4  ;;  %v383_v43 = vrot.slane %v382_v40, 4 }
  0xb2   : > { %v311_v32 = vsel %vm310_vm2, %v309_v31, %v308_v30  ;;  %v315_v33 = vmul.f32 %v309_v31, %v1129_v23  ;;  %v385_v48 = vsel %vm384_vm4, %v383_v43, %v382_v40  ;;  %v389_v49 = vmul.f32 %v383_v43, %v1129_v23  ;;  %v508_v30 = vpop.permute.xlu2 %507 }
  0xb3   : > { %v1145_v34 = vld.sshfl [vmem:[#allocation1 + $0x10] sm:$0xff pattern:$0x75316420]  ;;  %v314_v35 = vmul.f32 %v311_v32, %v1124_v20  ;;  %v388_v50 = vmul.f32 %v385_v48, %v1124_v20  ;;  %v504_v31 = vperm.slane %v501_v27, 1  ;;  %v489_v32 = vsel %vm268_vm0, %v477_v25, %v488_v26 }
  0xb4   : > { %v284_v37 = vld.sshfl [vmem:[#allocation1] sm:$0xff pattern:$0x75316420]  ;;  %v285_v38 = vld.sshfl [vmem:[#allocation1 + $0x8] sm:$0xff pattern:$0x75316420] }
  0xb5   : > { %318 = vst [vmem:[#allocation1] ss:$2 sm:$0xff] %v314_v35  ;;  %v510_v35 = vrot.slane %v508_v30, 4 }
  0xb6   : > { %320 = vst [vmem:[#allocation1 + $0x10] ss:$2 sm:$0xff] %v315_v33 }
  0xb7   : > { %v456_v4 = vpop.permute.xlu1 %455  ;;  %v454_v5 = vpop.permute.xlu0 %453 }
  0xb8   : > { %v458_v8 = vrot.slane %v456_v4, 4  ;;  %v457_v9 = vrot.slane %v454_v5, 4 }
  0xba   : > { %v459_v13 = vsel %vm268_vm0, %v457_v9, %v458_v8 }
  0xbb   : > { %v460_v17 = vsel %vm347_vm3, %v459_v13, %v456_v4 }
  0xbc   : > { %v322_v45 = vld.sshfl [vmem:[#allocation1 + $0x8] sm:$0xff pattern:$0x75316420]  ;;  %v321_v46 = vld.sshfl [vmem:[#allocation1] sm:$0xff pattern:$0x75316420] }
  0xbd   : > { %v323_v47 = vld.sshfl [vmem:[#allocation1 + $0x10] sm:$0xff pattern:$0x75316420]  ;;  %326 = vrot.lane.b32.xlu1 %v322_v45, %s988_s25  ;;  %324 = vrot.lane.b32.xlu0 %v321_v46, %s988_s25  ;;  %355 = vst [vmem:[#allocation1] ss:$2 sm:$0xff] %v351_v42 }
  0xbe   : > { %357 = vst [vmem:[#allocation1 + $0x10] ss:$2 sm:$0xff] %v352_v41  ;;  %328 = vrot.lane.b32.xlu2 %v323_v47, %s988_s25  ;;  %s922_s25 = sshra.s32 %s670_s20, 4  ;;  %s923_s25 = int_to_ptr.hbm [resolvable:$true] %s922_s25 }
  0xbf   : > { %v482_v18 = vpop.permute.xlu0 %481  ;;  %v506_v29 = vpop.permute.xlu1 %505  ;;  %p929_p12 = scmp.lt.s32.totalorder %s923_s25, %s1213_s4 }
  0xc0   : > { %v484_v21 = vrot.slane %v482_v18, 4 }
  0xc2   : > { %v485_v28 = vsel %vm268_vm0, %v483_v22, %v484_v21 }
  0xc3   : > { %v486_v33 = vsel %vm310_vm2, %v485_v28, %v482_v18 }
  0xc4   : > { %v359_v52 = vld.sshfl [vmem:[#allocation1 + $0x8] sm:$0xff pattern:$0x75316420]  ;;  %v358_v53 = vld.sshfl [vmem:[#allocation1] sm:$0xff pattern:$0x75316420]  ;;  %v491_v36 = vmul.f32 %v489_v32, %v486_v33 }
  0xc5   : > { %v360_v54 = vld.sshfl [vmem:[#allocation1 + $0x10] sm:$0xff pattern:$0x75316420]  ;;  %363 = vrot.lane.b32.xlu1 %v359_v52, %s989_s26  ;;  %361 = vrot.lane.b32.xlu0 %v358_v53, %s989_s26  ;;  %392 = vst [vmem:[#allocation1] ss:$2 sm:$0xff] %v388_v50 }
  0xc6   : > { %394 = vst [vmem:[#allocation1 + $0x10] ss:$2 sm:$0xff] %v389_v49  ;;  %365 = vrot.lane.b32.xlu2 %v360_v54, %s989_s26  ;;  %s924_s26 = scalar_lea.hbm %s923_s25, 16 }
  0xc7   : > { %p925_p1 = scmp.ne.s32.totalorder %s923_s25, %s924_s26  ;;  %p930_p8 = scmp.lt.s32.totalorder %s928_s30, %s924_s26 }
  0xc9   : > { %p926_p3 = pnand %p925_p1, %p1078_p13  ;;  %p931_p7 = por %p930_p8, %p929_p12 }
  0xcb   : > { %p927_p5 = pneg %p926_p3 }
  0xcc   : > { %v396_v61 = vld.sshfl [vmem:[#allocation1 + $0x8] sm:$0xff pattern:$0x75316420]  ;;  %v395_v62 = vld.sshfl [vmem:[#allocation1] sm:$0xff pattern:$0x75316420] }
  0xcd   : > { %v397_v0 = vld.sshfl [vmem:[#allocation1 + $0x10] sm:$0xff pattern:$0x75316420]  ;;  %400 = vrot.lane.b32.xlu1 %v396_v61, %s990_s27  ;;  %398 = vrot.lane.b32.xlu0 %v395_v62, %s990_s27  ;;  %413 = vst [vmem:[#allocation1] ss:$2 sm:$0xff] %v1124_v20  ;;  %v465_v20 = vmul.f32 %v463_v16, %v460_v17  ;;  %p932_p9 = pnand %p931_p7, %p927_p5 }
  0xce   : > { %415 = vst [vmem:[#allocation1 + $0x10] ss:$2 sm:$0xff] %v1129_v23  ;;  %402 = vrot.lane.b32.xlu2 %v397_v0, %s990_s27 }
  0xd4   : > { %v416_v10 = vld.sshfl [vmem:[#allocation1 + $0x8] sm:$0xff pattern:$0x75316420] }
  0xd5   : > { %420 = vst [vmem:[#allocation3 + $0x88] sm:$0xf] %v416_v10  ;;  %289 = vrot.lane.b32.xlu1 %v285_v38, %s991_s28  ;;  %287 = vrot.lane.b32.xlu0 %v284_v37, %s991_s28  ;;  %v503_v37 = vperm.slane %v501_v27, 0  ;;  %v514_v38 = vrot.slane %v504_v31, 4 }
  0xd6   : > { %291 = vrot.lane.b32.xlu2 %v1145_v34, %s991_s28  ;;  %441 = vst [vmem:[#allocation1] ss:$2 sm:$0xff] %v439_v7  ;;  %v509_v34 = vrot.slane %v506_v29, 4  ;;  %v417_v57 = vld.sshfl [vmem:[#allocation1 + $0x10] sm:$0xff pattern:$0x75316420] }
  0xd7   : > { %v515_v42 = vsel %vm268_vm0, %v503_v37, %v514_v38  ;;  %421 = vst [vmem:[#allocation3 + $0x40] sm:$0xf] %v417_v57 }
  0xd8   : > { %v511_v41 = vsel %vm268_vm0, %v509_v34, %v510_v35 }
  0xd9   : > { %v512_v43 = vsel %vm273_vm1, %v511_v41, %v508_v30 }
  0xda   : > { %v517_v44 = vmul.f32 %v515_v42, %v512_v43 }
  0xdc   : > { %v535_v59 = vld [vmem:[#allocation3 + $0x88] sm:$0xff] }
  0xdd   : > { %v442_v23 = vld.sshfl [vmem:[#allocation1] sm:$0xff pattern:$0x75316420]  ;;  %v443_v24 = vld.sshfl [vmem:[#allocation1 + $0x8] sm:$0xff pattern:$0x75316420]  ;;  %256 = vperm.xlu0 %839, %v253_v2  }
  0xde   : > { %446 = vst [vmem:[#allocation3 + $0x50] sm:$0xf] %v442_v23  ;;  %v536_v60 = vld [vmem:[#allocation3 + $0x40] sm:$0xff] }
  0xdf   : > { %447 = vst [vmem:[#allocation3 + $0x28] sm:$0xf] %v443_v24  ;;  %v526_v24 = vld [vmem:[%s1210_s1] sm:$0xff] }
  0xe0   : > { %467 = vst [vmem:[#allocation1] ss:$2 sm:$0xff] %v465_v20 }
  0xe5   : > { %v537_v55 = vld [vmem:[#allocation3 + $0x50] sm:$0xff] }
  0xe6   : > { %v538_v56 = vld [vmem:[#allocation3 + $0x28] sm:$0xff] }
  0xe7   : > { %v468_v39 = vld.sshfl [vmem:[#allocation1] sm:$0xff pattern:$0x75316420]  ;;  %v469_v40 = vld.sshfl [vmem:[#allocation1 + $0x8] sm:$0xff pattern:$0x75316420] }
  0xe8   : > { %472 = vst [vmem:[#allocation3 + $0x10] sm:$0xf] %v468_v39 }
  0xe9   : > { %473 = vst [vmem:[#allocation3 + $0x48] sm:$0xf] %v469_v40 }
  0xea   : > { %493 = vst [vmem:[#allocation1] ss:$2 sm:$0xff] %v491_v36 }
  0xef   : > { %v539_v53 = vld [vmem:[#allocation3 + $0x10] sm:$0xff] }
  0xf0   : > { %v540_v54 = vld [vmem:[#allocation3 + $0x48] sm:$0xff] }
  0xf1   : > { %v494_v45 = vld.sshfl [vmem:[#allocation1] sm:$0xff pattern:$0x75316420]  ;;  %v495_v46 = vld.sshfl [vmem:[#allocation1 + $0x8] sm:$0xff pattern:$0x75316420] }
  0xf2   : > { %519 = vst [vmem:[#allocation1] ss:$2 sm:$0xff] %v517_v44 }
  0xf3   : > { %498 = vst [vmem:[#allocation3 + $0x30] sm:$0xf] %v494_v45 }
  0xf4   : > { %499 = vst [vmem:[#allocation3 + $0x18] sm:$0xf] %v495_v46 }
  0xf9   : > { %v520_v47 = vld.sshfl [vmem:[#allocation1] sm:$0xff pattern:$0x75316420]  ;;  %v521_v48 = vld.sshfl [vmem:[#allocation1 + $0x8] sm:$0xff pattern:$0x75316420] }
  0xfa   : > { %524 = vst [vmem:[#allocation3 + $0x68] sm:$0xf] %v520_v47  ;;  %v541_v50 = vld [vmem:[#allocation3 + $0x30] sm:$0xff] }
  0xfb   : > { %525 = vst [vmem:[#allocation3 + $0x60] sm:$0xf] %v521_v48  ;;  %v542_v52 = vld [vmem:[#allocation3 + $0x18] sm:$0xff] }
 0x101   : > { %v543_v49 = vld [vmem:[#allocation3 + $0x68] sm:$0xff] }
 0x102   : > { %556 = vmatpush.msra.mxu0 %v543_v49  ;;  %v544_v51 = vld [vmem:[#allocation3 + $0x60] sm:$0xff] }
 0x103   : > { %576 = vmatpush.msra.mxu1 %v544_v51 }
 0x104   : > { %557 = vmatpush.msra.mxu0 %v541_v50 }
 0x105   : > { %577 = vmatpush.msra.mxu1 %v542_v52 }
 0x106   : > { %558 = vmatpush.msra.mxu0 %v539_v53 }
 0x107   : > { %578 = vmatpush.msra.mxu1 %v540_v54 }
 0x108   : > { %559 = vmatpush.msra.mxu0 %v537_v55 }
 0x109   : > { %579 = vmatpush.msra.mxu1 %v538_v56 }
 0x10a   : > { %560 = vmatpush.msra.mxu0 %v535_v59 }
 0x10b   : > { %580 = vmatpush.msra.mxu1 %v536_v60 }
 0x118   : > { %v329_v58 = vpop.permute.xlu2 %328 }
 0x120   : > { %v366_v1 = vpop.permute.xlu2 %365 }
 0x128   : > { %v403_v8 = vpop.permute.xlu2 %402 }
 0x12f   : > { %v327_v61 = vpop.permute.xlu1 %326  ;;  %v325_v62 = vpop.permute.xlu0 %324 }
 0x130   : > { %v332_v63 = vsel %vm330_vm5, %v327_v61, %v329_v58  ;;  %v331_v0 = vsel %vm330_vm5, %v325_v62, %v327_v61  ;;  %v292_v13 = vpop.permute.xlu2 %291 }
 0x131   : > { %336 = vst [vmem:[#allocation3 + $0x58] sm:$0xf] %v332_v63 }
 0x132   : > { %335 = vst [vmem:[#allocation3 + $0x78] sm:$0xf] %v331_v0 }
 0x137   : > { %v364_v4 = vpop.permute.xlu1 %363  ;;  %v362_v5 = vpop.permute.xlu0 %361 }
 0x138   : > { %v369_v6 = vsel %vm367_vm6, %v364_v4, %v366_v1  ;;  %v368_v7 = vsel %vm367_vm6, %v362_v5, %v364_v4  ;;  %v530_v22 = vld [vmem:[#allocation3 + $0x58] sm:$0xff] }
 0x139   : > { %373 = vst [vmem:[#allocation3 + $0x8] sm:$0xf] %v369_v6  ;;  %v529_v23 = vld [vmem:[#allocation3 + $0x78] sm:$0xff] }
 0x13a   : > { %372 = vst [vmem:[#allocation3 + $0x20] sm:$0xf] %v368_v7 }
 0x13f   : > { %v401_v9 = vpop.permute.xlu1 %400  ;;  %v399_v10 = vpop.permute.xlu0 %398 }
 0x140   : > { %v406_v11 = vsel %vm404_vm7, %v401_v9, %v403_v8  ;;  %v405_v12 = vsel %vm404_vm7, %v399_v10, %v401_v9  ;;  %v532_v20 = vld [vmem:[#allocation3 + $0x8] sm:$0xff] }
 0x141   : > { %410 = vst [vmem:[#allocation3 + $0x80] sm:$0xf] %v406_v11  ;;  %v531_v21 = vld [vmem:[#allocation3 + $0x20] sm:$0xff] }
 0x142   : > { %409 = vst [vmem:[#allocation3 + $0x70] sm:$0xf] %v405_v12 }
 0x147   : > { %v290_v14 = vpop.permute.xlu1 %289  ;;  %v288_v15 = vpop.permute.xlu0 %287 }
 0x148   : > { %v295_v16 = vsel %vm293_vm8, %v290_v14, %v292_v13  ;;  %v294_v17 = vsel %vm293_vm8, %v288_v15, %v290_v14  ;;  %v534_v18 = vld [vmem:[#allocation3 + $0x80] sm:$0xff] }
 0x149   : > { %299 = vst [vmem:[#allocation3 + $0x38] sm:$0xf] %v295_v16  ;;  %v533_v19 = vld [vmem:[#allocation3 + $0x70] sm:$0xff]  ;;  %581 = vmatpush.msra.mxu1 %v534_v18 }
 0x14a   : > { %298 = vst [vmem:[#allocation3] sm:$0xf] %v294_v17  ;;  %561 = vmatpush.msra.mxu0 %v533_v19 }
 0x14b   : > { %582 = vmatpush.msra.mxu1 %v532_v20 }
 0x14c   : > { %562 = vmatpush.msra.mxu0 %v531_v21 }
 0x14d   : > { %583 = vmatpush.msra.mxu1 %v530_v22 }
 0x14e   : > { %563 = vmatpush.msra.mxu0 %v529_v23 }
 0x14f   : > { %v257_v27 = vpop.permute.xlu0 %256 }
 0x150   : > { %v528_v25 = vld [vmem:[#allocation3 + $0x38] sm:$0xff] }
 0x151   : > { %v527_v26 = vld [vmem:[#allocation3] sm:$0xff]  ;;  %584 = vmatpush.msra.mxu1 %v528_v25 }
 0x152   : > { %564 = vmatpush.msra.mxu0 %v527_v26  ;;  %762 = vmatmul.msk.f32.vlgmr.msra.gmra.mxu1 %vm545_vm9, %v526_v24 }
 0x153   : > { %761 = vmatmul.msk.f32.vlgmr.msra.gmra.mxu0 %vm545_vm9, %v526_v24 }
 0x1cf   : > { %v586_v28 = vpop.f32.mrf.mxu1 }
 0x1d0   : > { %v566_v29 = vpop.f32.mrf.mxu0  ;;  %v590_v30 = vadd.f32 %v586_v28, %v257_v27 }
 0x1d1   : > { %v589_v31 = vadd.f32 %v566_v29, %v257_v27 }
 0x1d2   : > { %v597_v32 = vrot.slane %v590_v30, 4 }
 0x1d3   : > { %v591_v33 = vrot.slane %v589_v31, 4 }
 0x1d4   : > { %v598_v34 = vmax.f32 %v590_v30, %v597_v32 }
 0x1d5   : > { %v592_v35 = vmax.f32 %v589_v31, %v591_v33 }
 0x1d6   : > { %v599_v36 = vrot.slane %v598_v34, 2 }
 0x1d7   : > { %v593_v37 = vrot.slane %v592_v35, 2 }
 0x1d8   : > { %v600_v38 = vmax.f32 %v598_v34, %v599_v36 }
 0x1d9   : > { %v594_v39 = vmax.f32 %v592_v35, %v593_v37 }
 0x1da   : > { %v601_v40 = vrot.slane %v600_v38, 1 }
 0x1db   : > { %v595_v41 = vrot.slane %v594_v39, 1 }
 0x1dc   : > { %v602_v42 = vmax.f32 %v600_v38, %v601_v40 }
 0x1dd   : > { %v596_v43 = vmax.f32 %v594_v39, %v595_v41 }
 0x1de   : > { %v604_v44 = vsub.f32 %v590_v30, %v602_v42 }
 0x1df   : > { %v603_v45 = vsub.f32 %v589_v31, %v596_v43 }
 0x1e0   : > { %v607_v46 = vmul.f32 1.442695, %v604_v44 }
 0x1e1   : > { %v605_v47 = vmul.f32 1.442695, %v603_v45 }
 0x1e2   : > { %840 = vpow2.f32 %v607_v46 }
 0x1e3   : > { %842 = vpow2.f32 %v605_v47 }
 0x1e8   : > { %v841_v48 = vpop.eup %840 }
 0x1e9   : > { %v843_v49 = vpop.eup %842  ;;  %v615_v50 = vrot.slane %v841_v48, 4 }
 0x1ea   : > { %v609_v51 = vrot.slane %v843_v49, 4 }
 0x1eb   : > { %v616_v52 = vadd.f32 %v841_v48, %v615_v50 }
 0x1ec   : > { %v610_v53 = vadd.f32 %v843_v49, %v609_v51 }
 0x1ed   : > { %v617_v54 = vrot.slane %v616_v52, 2 }
 0x1ee   : > { %v611_v55 = vrot.slane %v610_v53, 2 }
 0x1ef   : > { %v618_v56 = vadd.f32 %v617_v54, %v616_v52 }
 0x1f0   : > { %v612_v57 = vadd.f32 %v611_v55, %v610_v53 }
 0x1f1   : > { %v619_v58 = vrot.slane %v618_v56, 1 }
 0x1f2   : > { %v613_v59 = vrot.slane %v612_v57, 1 }
 0x1f3   : > { %v620_v60 = vadd.f32 %v619_v58, %v618_v56 }
 0x1f4   : > { %v614_v61 = vadd.f32 %v613_v59, %v612_v57 }
 0x1f5   : > { %844 = vrcp.f32 %v620_v60  ;;  %v647_v4 = vand.u32 2147483648, %v620_v60  ;;  %v645_v7 = vand.u32 2147483647, %v620_v60  ;;  %vm641_vm12 = vweird.f32 %v620_v60 }
 0x1f6   : > { %846 = vrcp.f32 %v614_v61  ;;  %v632_v5 = vand.u32 2147483648, %v614_v61  ;;  %v630_v9 = vand.u32 2147483647, %v614_v61  ;;  %vm626_vm13 = vweird.f32 %v614_v61 }
 0x1f7   : > { %v648_v12 = vor.u32 1.1754944e-38, %v647_v4  ;;  %vm646_vm0 = vcmp.eq.f32.partialorder %v645_v7, 8.507059e+37 }
 0x1f8   : > { %v633_v13 = vor.u32 1.1754944e-38, %v632_v5  ;;  %vm631_vm1 = vcmp.eq.f32.partialorder %v630_v9, 8.507059e+37 }
 0x1fb   : > { %v845_v62 = vpop.eup %844 }
 0x1fc   : > { %v847_v63 = vpop.eup %846  ;;  %v637_v0 = vmul.f32 %v845_v62, %v620_v60  ;;  %vm642_vm10 = vweird.f32 %v845_v62 }
 0x1fd   : > { %v622_v1 = vmul.f32 %v847_v63, %v614_v61  ;;  %vm627_vm11 = vweird.f32 %v847_v63  ;;  %vm643_vm14 = vmor %vm641_vm12, %vm642_vm10 }
 0x1fe   : > { %v638_v2 = vsub.f32 1.0, %v637_v0  ;;  %vm628_vm15 = vmor %vm626_vm13, %vm627_vm11 }
 0x1ff   : > { %v623_v3 = vsub.f32 1.0, %v622_v1 }
 0x200   : > { %v639_v6 = vmul.f32 %v845_v62, %v638_v2 }
 0x201   : > { %v624_v8 = vmul.f32 %v847_v63, %v623_v3 }
 0x202   : > { %v640_v10 = vadd.f32 %v845_v62, %v639_v6 }
 0x203   : > { %v625_v11 = vadd.f32 %v847_v63, %v624_v8 }
 0x204   : > { %v644_v14 = vsel %vm643_vm14, %v845_v62, %v640_v10 }
 0x205   : > { %v629_v15 = vsel %vm628_vm15, %v847_v63, %v625_v11  ;;  %v649_v16 = vsel %vm646_vm0, %v648_v12, %v644_v14 }
 0x206   : > { %v634_v17 = vsel %vm631_vm1, %v633_v13, %v629_v15  ;;  %v650_v18 = vmul.f32 %v841_v48, %v649_v16 }
 0x207   : > { %v635_v19 = vmul.f32 %v843_v49, %v634_v17 }
 0x208   : > { %652 = vst [vmem:[%s232_s22 + $0x8] sm:$0xff] %v650_v18 }
 0x209   : > { %651 = vst [vmem:[%s232_s22] sm:$0xff] %v635_v19 }
 0x20a   : > { %935 = shalt.err (!%p932_p9)
}
 0x20b   : > { %776 = dma.vmem_to_hbm [thread:$0]  (%p1078_p13), %s668_s7, 256, %s670_s20, %s654_s24  }
 0x20c PF: > { %s681_s9 = sand.u32 1, %s966_s15   ;;  %p1219_p10 = scmp.ge.s32.totalorder %s978_s18, 2 }
 0x20d   : > { %s682_s12 = scalar_lea.sflag [#allocation6], %s681_s9 }
 0x20e   : > { %p787_p11 = pnand %p1219_p10, %p1083_p4 }
 0x210   : > { %p788_p0 = pneg %p787_p11 }
 0x212   : > { %961 = dma.done.wait (%p788_p0), %s682_s12, 256  }
 0x213   : > { %963 = vsyncadd (%p788_p0), %s682_s12, 4294967040  ;;  %p18_p2 = scmp.ge.s32.totalorder %s1058_s29, 4   ;;  %s1220_s15 = smov %s970_s16 }
 0x214   : > { %s1221_s16 = smov %s974_s17  ;;  %s1222_s17 = smov %s1070_s6 }
 0x215   : > { %s1223_s18 = smov %s1058_s29  ;;  %20 = sbr.rel (!%p18_p2) target bundleno = 6 (0x6), region = 97 }
 0x21a   :  { %688 = vsyncpa [#allocation5], 1 }
 0x21b   :  { %690 = vsyncpa [#allocation5 + $0x1], 1 }
 0x21c   :  { %691 = vsyncpa [#allocation8], 1 }
 0x21d   :  { %692 = vsyncpa [#allocation6], 1 }
 0x21e   :  { %694 = vsyncpa [#allocation6 + $0x1], 1 }

</bundles_post_ra>
